<compile_context>
chip_gen: v5e
topology: v5e:2x2
jax: 0.10.0
libtpu: 0.0.40
codegen_flags: <defaults>
</compile_context>

<pallas_src>
import functools

import jax
import jax.numpy as jnp
from jax.experimental import pallas as pl
from jax.experimental.pallas import tpu as pltpu


def _round_up(x: int, m: int) -> int:
    return (x + m - 1) // m * m


def _vmem_budget_bytes() -> int:
    """Generation-aware VMEM budget: ~80% of physical per-core VMEM."""
    try:
        cap = int(pltpu.get_tpu_info().vmem_capacity_bytes)
    except Exception:
        cap = 128 * 1024 * 1024
    return max(32 * 1024 * 1024, int(cap * 0.8))


def _pick_row_tile(m: int, tile_m: int, itemsize: int, min_steps: int = 2):
    """Row tile + padded row count.

    256-row alignment for M >= 256 (full MXU passes on v6e/v7x); otherwise the
    dtype sublane minimum.  Shrinks the tile until the parallel grid has at
    least `min_steps` steps so both v7x TensorCores get work.
    """
    row_align = 16 if itemsize == 2 else 8
    if m >= 256:
        row_align = 256
    tm = min(max(tile_m, row_align), _round_up(m, row_align))
    tm = _round_up(tm, row_align)
    while tm > row_align and _round_up(m, tm) // tm < min_steps:
        tm = _round_up(max(row_align, tm // 2), row_align)
    return tm, _round_up(m, tm)


def _pick_tile(total: int, pref: int) -> int:
    if total <= pref:
        return total
    for c in (pref, 512, 256, 128):
        if total % c == 0:
            return c
    return total


# --------------------------------------------------------------------------
# Fused path: all layers in one kernel, weights fully resident in VMEM.
# --------------------------------------------------------------------------
def _mlp_fused_kernel(*refs, num_layers: int):
    """refs = (x, w0, b0, ..., w_{L-1}, b_{L-1}, out).

    x block:  [tm, K0]             (compute dtype, real feature width)
    w_l:      [K_l, N_l_pad]       (compute dtype, whole array resident)
    b_l:      [1, N_l_pad]         (f32 bias row)
    out:      [tm, N_last_pad]
    Hidden activations live only in VMEM/vregs.
    """
    x_ref = refs[0]
    o_ref = refs[-1]
    p = refs[1:-1]

    h = x_ref[...]
    for l in range(num_layers):
        w = p[2 * l][...]
        b = p[2 * l + 1][...]                       # (1, N) f32, broadcast over rows
        y = jnp.dot(h, w, preferred_element_type=jnp.float32) + b
        if l != num_layers - 1:
            if jnp.dtype(w.dtype).itemsize == 2:
                # cast-then-relu == relu-then-cast for max(x, 0); bf16 VALU on
                # v6e/v7x halves vreg traffic for the (tm, N) intermediate.
                h = jnp.maximum(y.astype(w.dtype), 0)
            else:
                h = jnp.maximum(y, 0.0)             # f32 VALU order kept for v5e
        else:
            h = y
    o_ref[...] = h.astype(o_ref.dtype)


def _build_fused_call(x_shape, padded_params, *, out_dtype, tm, vmem_limit,
                      single_buffer_weights):
    m_pad, k0 = x_shape
    num_layers = len(padded_params) // 2
    n_out_pad = padded_params[-2].shape[1]
    cdt = padded_params[0].dtype
    itemsize = jnp.dtype(cdt).itemsize
    out_isz = jnp.dtype(out_dtype).itemsize

    weight_kwargs = {}
    if single_buffer_weights:
        # Constant index_map -> fetched once and revisited; single-buffer to
        # halve the resident weight footprint (biggest VMEM lever on v7x).
        weight_kwargs = dict(pipeline_mode=pl.Buffered(1))

    # TODO(synk): if profiling shows the x/out DMA exposed (tiny dim_hidden),
    # raise the streamed specs to pipeline_mode=pl.Buffered(3) funded by the
    # VMEM freed above.
    in_specs = [pl.BlockSpec((tm, k0), lambda i: (i, 0))]
    for l in range(num_layers):
        kl, nl = padded_params[2 * l].shape
        in_specs.append(pl.BlockSpec((kl, nl), lambda i: (0, 0), **weight_kwargs))
        in_specs.append(pl.BlockSpec((1, nl), lambda i: (0, 0), **weight_kwargs))
    out_specs = pl.BlockSpec((tm, n_out_pad), lambda i: (i, 0))

    flops = 0
    weight_bytes = 0
    for l in range(num_layers):
        kl, nl = padded_params[2 * l].shape
        flops += 2 * m_pad * kl * nl
        weight_bytes += kl * nl * itemsize + nl * 4
    bytes_accessed = int(m_pad * k0 * itemsize + weight_bytes
                         + m_pad * n_out_pad * out_isz)

    kernel = functools.partial(_mlp_fused_kernel, num_layers=num_layers)
    return pl.pallas_call(
        kernel,
        out_shape=jax.ShapeDtypeStruct((m_pad, n_out_pad), out_dtype),
        grid_spec=pltpu.PrefetchScalarGridSpec(
            num_scalar_prefetch=0,
            grid=(m_pad // tm,),
            in_specs=in_specs,
            out_specs=out_specs,
        ),
        compiler_params=pltpu.CompilerParams(
            dimension_semantics=("parallel",),
            vmem_limit_bytes=vmem_limit,
        ),
        cost_estimate=pl.CostEstimate(
            flops=flops, transcendentals=0, bytes_accessed=bytes_accessed),
    )


# --------------------------------------------------------------------------
# Tiled fallback path: per-layer K/N-tiled matmul + bias (+ReLU), used when the
# padded weights would not fit the per-generation VMEM budget (e.g. v7x 64 MiB).
# --------------------------------------------------------------------------
def _linear_tiled_kernel(x_ref, w_ref, b_ref, o_ref, acc_ref, *, apply_relu):
    @pl.when(pl.program_id(2) == 0)
    def _():
        acc_ref[...] = jnp.zeros_like(acc_ref)

    acc_ref[...] += jnp.dot(x_ref[...], w_ref[...],
                            preferred_element_type=jnp.float32)

    @pl.when(pl.program_id(2) == pl.num_programs(2) - 1)
    def _():
        y = acc_ref[...] + b_ref[...]
        if apply_relu:
            y = jnp.maximum(y, 0.0)
        o_ref[...] = y.astype(o_ref.dtype)


def _linear_tiled(x, w, b, *, apply_relu, out_dtype, tm, vmem_limit,
                  tile_n=512, tile_k=512):
    m_pad, k_dim = x.shape
    _, n_dim = w.shape
    tn = _pick_tile(n_dim, tile_n)
    tk = _pick_tile(k_dim, tile_k)
    grid = (m_pad // tm, n_dim // tn, k_dim // tk)

    itemsize = jnp.dtype(x.dtype).itemsize
    flops = 2 * m_pad * k_dim * n_dim
    bytes_accessed = int(m_pad * k_dim * itemsize + k_dim * n_dim * itemsize
                         + n_dim * 4 + m_pad * n_dim * jnp.dtype(out_dtype).itemsize)

    kernel = functools.partial(_linear_tiled_kernel, apply_relu=apply_relu)
    return pl.pallas_call(
        kernel,
        out_shape=jax.ShapeDtypeStruct((m_pad, n_dim), out_dtype),
        grid_spec=pltpu.PrefetchScalarGridSpec(
            num_scalar_prefetch=0,
            grid=grid,
            in_specs=[
                pl.BlockSpec((tm, tk), lambda i, j, k: (i, k)),
                pl.BlockSpec((tk, tn), lambda i, j, k: (k, j)),
                pl.BlockSpec((1, tn), lambda i, j, k: (0, j)),
            ],
            out_specs=pl.BlockSpec((tm, tn), lambda i, j, k: (i, j)),
            scratch_shapes=[pltpu.VMEM((tm, tn), jnp.float32)],
        ),
        compiler_params=pltpu.CompilerParams(
            dimension_semantics=("parallel", "parallel", "arbitrary"),
            vmem_limit_bytes=vmem_limit,
        ),
        cost_estimate=pl.CostEstimate(
            flops=flops, transcendentals=0, bytes_accessed=bytes_accessed),
    )(x, w, b)


# --------------------------------------------------------------------------
# Dispatcher
# --------------------------------------------------------------------------
def mlp_forward_pallas(x2d, padded_params, *, out_dtype, tile_m=512,
                       force_tiled=False):
    """x2d: [M, in_channels] in compute dtype (features NOT padded in HBM).

    Returns [m_pad, n_out_pad]; the caller slices off the padding.
    """
    m_rows, k0 = x2d.shape
    num_layers = len(padded_params) // 2
    cdt = padded_params[0].dtype
    itemsize = jnp.dtype(cdt).itemsize
    out_isz = jnp.dtype(out_dtype).itemsize
    n_out_pad = padded_params[-2].shape[1]

    tm, m_pad = _pick_row_tile(m_rows, tile_m, itemsize)
    if m_pad != m_rows:
        x2d = jnp.pad(x2d, ((0, m_pad - m_rows), (0, 0)))

    vmem_limit = _vmem_budget_bytes()

    # Fused-path residency estimate: single-buffered weights, double-buffered
    # x/out streams, plus f32 intermediate headroom (compiler temporaries).
    weight_bytes = 0
    max_n = 0
    for l in range(num_layers):
        kl, nl = padded_params[2 * l].shape
        weight_bytes += kl * nl * itemsize + nl * 4
        max_n = max(max_n, nl)
    stream_bytes = 2 * tm * k0 * itemsize + 2 * tm * n_out_pad * out_isz
    temp_bytes = 2 * tm * max_n * 4
    fused_needed = weight_bytes + stream_bytes + temp_bytes

    if force_tiled or fused_needed > vmem_limit:
        # K/N-tiled per-layer path: weights streamed in tiles, f32 accumulator,
        # hidden activations round-trip HBM in the compute dtype.
        h = x2d
        for l in range(num_layers):
            last = l == num_layers - 1
            h = _linear_tiled(
                h, padded_params[2 * l], padded_params[2 * l + 1],
                apply_relu=not last,
                out_dtype=out_dtype if last else cdt,
                tm=tm, vmem_limit=vmem_limit)
        return h

    builder = functools.partial(
        _build_fused_call, (m_pad, k0), padded_params,
        out_dtype=out_dtype, tm=tm, vmem_limit=vmem_limit)
    try:
        return builder(single_buffer_weights=True)(x2d, *padded_params)
    except Exception:
        # pl.Buffered(1) not accepted on this jax/libtpu combo -> default
        # (double-buffered) weight specs.
        return builder(single_buffer_weights=False)(x2d, *padded_params)


class MLPPallas:
    """Pallas port of the PyTorch MLP: num_layers Linear layers, ReLU between."""

    def __init__(self, in_channels, out_channels, dim_hidden, num_layers,
                 bias=True, key=jax.random.PRNGKey(0), dtype=jnp.float32,
                 compute_dtype=jnp.bfloat16, tile_m=512, force_tiled=False):
        self.in_channels = in_channels
        self.out_channels = out_channels
        self.dim_hidden = dim_hidden
        self.num_layers = num_layers
        self.compute_dtype = compute_dtype
        self.out_dtype = dtype
        self.tile_m = tile_m
        self.force_tiled = force_tiled

        self.raw_params = []       # f32 (w_t [in,out], b [out]) -- reference semantics
        padded = []
        for l in range(num_layers):
            fan_in = in_channels if l == 0 else dim_hidden
            fan_out = out_channels if l == num_layers - 1 else dim_hidden
            key, wk, bk = jax.random.split(key, 3)
            # Deterministic init mimicking nn.Linear's uniform(-1/sqrt(fan_in), ...)
            bound = 1.0 / (fan_in ** 0.5)
            w = jax.random.uniform(wk, (fan_out, fan_in), jnp.float32, -bound, bound)
            if bias:
                b = jax.random.uniform(bk, (fan_out,), jnp.float32, -bound, bound)
            else:
                b = jnp.zeros((fan_out,), jnp.float32)
            w_t = w.T                                    # [in, out]
            self.raw_params.append((w_t, b))

            # Pad feature axes to 128-multiples in the COMPUTE dtype.  The
            # first layer's K axis stays at in_channels so the activation
            # stream is read at its real width (no HBM zero padding).
            kp = fan_in if l == 0 else _round_up(fan_in, 128)
            n_pad = _round_up(fan_out, 128)
            w_pad = jnp.zeros((kp, n_pad), compute_dtype)
            w_pad = w_pad.at[:fan_in, :fan_out].set(w_t.astype(compute_dtype))
            b_pad = jnp.zeros((1, n_pad), jnp.float32)
            b_pad = b_pad.at[0, :fan_out].set(b)
            padded += [w_pad, b_pad]
        self.padded_params = tuple(padded)
        # TODO(synk): fp8-weight path for v7x (fp8 resident weights, bf16
        # activations) to halve weight VMEM/DMA again.

    def __call__(self, x):
        lead = x.shape[:-1]
        h = x.reshape(-1, x.shape[-1]).astype(self.compute_dtype)
        m_rows = h.shape[0]
        y = mlp_forward_pallas(h, self.padded_params, out_dtype=self.out_dtype,
                               tile_m=self.tile_m, force_tiled=self.force_tiled)
        y = y[:m_rows, :self.out_channels]
        return y.reshape(*lead, self.out_channels)


if __name__ == "__main__":
    key = jax.random.PRNGKey(0)
    in_channels, out_channels, dim_hidden, num_layers = 16, 8, 32, 3

    def make_ref(mlp):
        def ref_forward(x):
            lead = x.shape[:-1]
            h = x.reshape(-1, in_channels).astype(jnp.float32)
            for l, (w_t, b) in enumerate(mlp.raw_params):
                h = h @ w_t + b
                if l != num_layers - 1:
                    h = jnp.maximum(h, 0.0)
            return h.reshape(*lead, out_channels)
        return ref_forward

    # Default path: bf16 compute dtype, f32 MXU accumulation, fused kernel.
    mlp = MLPPallas(in_channels, out_channels, dim_hidden, num_layers,
                    bias=True, key=key)
    ref = make_ref(mlp)

    # Case 1: batch=2, seq=4 (M=8 rows) -- bf16 tolerance vs the f32 reference.
    x1 = jax.random.normal(jax.random.fold_in(key, 1), (2, 4, in_channels), jnp.float32)
    y1 = jax.block_until_ready(mlp(x1))
    assert y1.shape == (2, 4, out_channels), y1.shape
    assert jnp.allclose(y1.astype(jnp.float32), ref(x1), atol=5e-2, rtol=5e-2)

    # Case 2: ragged row count (M=15) -- exercises row padding / tile selection.
    x2 = jax.random.normal(jax.random.fold_in(key, 2), (3, 5, in_channels), jnp.float32)
    y2 = jax.block_until_ready(mlp(x2))
    assert y2.shape == (3, 5, out_channels), y2.shape
    assert jnp.allclose(y2.astype(jnp.float32), ref(x2), atol=5e-2, rtol=5e-2)

    # Case 3: f32 compute path -- tight tolerance vs the reference.
    mlp_f32 = MLPPallas(in_channels, out_channels, dim_hidden, num_layers,
                        bias=True, key=key, compute_dtype=jnp.float32)
    y3 = jax.block_until_ready(mlp_f32(x1))
    assert y3.shape == (2, 4, out_channels), y3.shape
    assert jnp.allclose(y3, make_ref(mlp_f32)(x1), atol=1e-5, rtol=1e-5)

    # Case 4: forced K/N-tiled fallback (the path used when padded weights
    # exceed the per-generation VMEM budget, e.g. huge dim_hidden on v7x).
    mlp_tiled = MLPPallas(in_channels, out_channels, dim_hidden, num_layers,
                          bias=True, key=key, compute_dtype=jnp.float32,
                          force_tiled=True)
    y4 = jax.block_until_ready(mlp_tiled(x1))
    assert y4.shape == (2, 4, out_channels), y4.shape
    assert jnp.allclose(y4, make_ref(mlp_tiled)(x1), atol=1e-5, rtol=1e-5)

    print("KERNEL_OK")
</pallas_src>

<mosaic_0001>
module attributes {stable_mosaic.version = 11 : i64} {
  func.func @_mlp_fused_kernel(%arg0: i32, %arg1: memref<16x16xbf16, #tpu.memory_space<vmem>>, %arg2: memref<16x128xbf16, #tpu.memory_space<vmem>>, %arg3: memref<1x128xf32, #tpu.memory_space<vmem>>, %arg4: memref<128x128xbf16, #tpu.memory_space<vmem>>, %arg5: memref<1x128xf32, #tpu.memory_space<vmem>>, %arg6: memref<128x128xbf16, #tpu.memory_space<vmem>>, %arg7: memref<1x128xf32, #tpu.memory_space<vmem>>, %arg8: memref<16x128xf32, #tpu.memory_space<vmem>>) attributes {dimension_semantics = [#tpu.dimension_semantics<parallel>], iteration_bounds = array<i64: 1>, scalar_prefetch = 0 : i64, scratch_operands = 0 : i64, tpu.core_type = #tpu.core_type<tc>, window_params = [{transform_indices = @transform_0, window_bounds = array<i64: 16, 16>}, {pipeline_mode = #tpu.pipeline_mode<synchronous>, transform_indices = @transform_1, window_bounds = array<i64: 16, 128>}, {pipeline_mode = #tpu.pipeline_mode<synchronous>, transform_indices = @transform_2, window_bounds = array<i64: 1, 128>}, {pipeline_mode = #tpu.pipeline_mode<synchronous>, transform_indices = @transform_3, window_bounds = array<i64: 128, 128>}, {pipeline_mode = #tpu.pipeline_mode<synchronous>, transform_indices = @transform_4, window_bounds = array<i64: 1, 128>}, {pipeline_mode = #tpu.pipeline_mode<synchronous>, transform_indices = @transform_5, window_bounds = array<i64: 128, 128>}, {pipeline_mode = #tpu.pipeline_mode<synchronous>, transform_indices = @transform_6, window_bounds = array<i64: 1, 128>}, {transform_indices = @transform_7, window_bounds = array<i64: 16, 128>}]} {
    %c0 = arith.constant 0 : index
    %c0_0 = arith.constant 0 : index
    %0 = vector.load %arg1[%c0, %c0_0] : memref<16x16xbf16, #tpu.memory_space<vmem>>, vector<16x16xbf16>
    %c0_1 = arith.constant 0 : index
    %c0_2 = arith.constant 0 : index
    %1 = vector.load %arg2[%c0_1, %c0_2] : memref<16x128xbf16, #tpu.memory_space<vmem>>, vector<16x128xbf16>
    %c0_3 = arith.constant 0 : index
    %c0_4 = arith.constant 0 : index
    %2 = vector.load %arg3[%c0_3, %c0_4] : memref<1x128xf32, #tpu.memory_space<vmem>>, vector<1x128xf32>
    %cst = arith.constant dense<0.000000e+00> : vector<16x128xf32>
    %3 = tpu.matmul %0, %1, %cst {dimension_numbers = #tpu.dot_dimension_numbers<[1], [0], [0], [1], [0, 0, 1, 1], [], []>} : vector<16x16xbf16>, vector<16x128xbf16>, vector<16x128xf32> -> vector<16x128xf32>
    %4 = vector.broadcast %2 : vector<1x128xf32> to vector<16x128xf32>
    %5 = arith.addf %3, %4 : vector<16x128xf32>
    %6 = arith.truncf %5 : vector<16x128xf32> to vector<16x128xbf16>
    %cst_5 = arith.constant 0.000000e+00 : bf16
    %7 = vector.broadcast %cst_5 : bf16 to vector<16x128xbf16>
    %8 = arith.maximumf %6, %7 : vector<16x128xbf16>
    %c0_6 = arith.constant 0 : index
    %c0_7 = arith.constant 0 : index
    %9 = vector.load %arg4[%c0_6, %c0_7] : memref<128x128xbf16, #tpu.memory_space<vmem>>, vector<128x128xbf16>
    %c0_8 = arith.constant 0 : index
    %c0_9 = arith.constant 0 : index
    %10 = vector.load %arg5[%c0_8, %c0_9] : memref<1x128xf32, #tpu.memory_space<vmem>>, vector<1x128xf32>
    %cst_10 = arith.constant dense<0.000000e+00> : vector<16x128xf32>
    %11 = tpu.matmul %8, %9, %cst_10 {dimension_numbers = #tpu.dot_dimension_numbers<[1], [0], [0], [1], [0, 0, 1, 1], [], []>} : vector<16x128xbf16>, vector<128x128xbf16>, vector<16x128xf32> -> vector<16x128xf32>
    %12 = vector.broadcast %10 : vector<1x128xf32> to vector<16x128xf32>
    %13 = arith.addf %11, %12 : vector<16x128xf32>
    %14 = arith.truncf %13 : vector<16x128xf32> to vector<16x128xbf16>
    %cst_11 = arith.constant 0.000000e+00 : bf16
    %15 = vector.broadcast %cst_11 : bf16 to vector<16x128xbf16>
    %16 = arith.maximumf %14, %15 : vector<16x128xbf16>
    %c0_12 = arith.constant 0 : index
    %c0_13 = arith.constant 0 : index
    %17 = vector.load %arg6[%c0_12, %c0_13] : memref<128x128xbf16, #tpu.memory_space<vmem>>, vector<128x128xbf16>
    %c0_14 = arith.constant 0 : index
    %c0_15 = arith.constant 0 : index
    %18 = vector.load %arg7[%c0_14, %c0_15] : memref<1x128xf32, #tpu.memory_space<vmem>>, vector<1x128xf32>
    %cst_16 = arith.constant dense<0.000000e+00> : vector<16x128xf32>
    %19 = tpu.matmul %16, %17, %cst_16 {dimension_numbers = #tpu.dot_dimension_numbers<[1], [0], [0], [1], [0, 0, 1, 1], [], []>} : vector<16x128xbf16>, vector<128x128xbf16>, vector<16x128xf32> -> vector<16x128xf32>
    %20 = vector.broadcast %18 : vector<1x128xf32> to vector<16x128xf32>
    %21 = arith.addf %19, %20 : vector<16x128xf32>
    %c0_17 = arith.constant 0 : index
    %c0_18 = arith.constant 0 : index
    %22 = vector.load %arg8[%c0_17, %c0_18] : memref<16x128xf32, #tpu.memory_space<vmem>>, vector<16x128xf32>
    tpu.vector_store %arg8[%c0_17, %c0_18], %21 {strides = array<i32>} : memref<16x128xf32, #tpu.memory_space<vmem>>, vector<16x128xf32>,
    return
  }
  func.func @transform_0(%arg0: i32) -> (i32, i32) {
    %c0_i32 = arith.constant 0 : i32
    %c0_i32_0 = arith.constant 0 : i32
    return %arg0, %c0_i32 : i32, i32
  }
  func.func @transform_1(%arg0: i32) -> (i32, i32) {
    %c0_i32 = arith.constant 0 : i32
    %c0_i32_0 = arith.constant 0 : i32
    %c0_i32_1 = arith.constant 0 : i32
    return %c0_i32, %c0_i32_0 : i32, i32
  }
  func.func @transform_2(%arg0: i32) -> (i32, i32) {
    %c0_i32 = arith.constant 0 : i32
    %c0_i32_0 = arith.constant 0 : i32
    %c0_i32_1 = arith.constant 0 : i32
    return %c0_i32, %c0_i32_0 : i32, i32
  }
  func.func @transform_3(%arg0: i32) -> (i32, i32) {
    %c0_i32 = arith.constant 0 : i32
    %c0_i32_0 = arith.constant 0 : i32
    %c0_i32_1 = arith.constant 0 : i32
    return %c0_i32, %c0_i32_0 : i32, i32
  }
  func.func @transform_4(%arg0: i32) -> (i32, i32) {
    %c0_i32 = arith.constant 0 : i32
    %c0_i32_0 = arith.constant 0 : i32
    %c0_i32_1 = arith.constant 0 : i32
    return %c0_i32, %c0_i32_0 : i32, i32
  }
  func.func @transform_5(%arg0: i32) -> (i32, i32) {
    %c0_i32 = arith.constant 0 : i32
    %c0_i32_0 = arith.constant 0 : i32
    %c0_i32_1 = arith.constant 0 : i32
    return %c0_i32, %c0_i32_0 : i32, i32
  }
  func.func @transform_6(%arg0: i32) -> (i32, i32) {
    %c0_i32 = arith.constant 0 : i32
    %c0_i32_0 = arith.constant 0 : i32
    %c0_i32_1 = arith.constant 0 : i32
    return %c0_i32, %c0_i32_0 : i32, i32
  }
  func.func @transform_7(%arg0: i32) -> (i32, i32) {
    %c0_i32 = arith.constant 0 : i32
    %c0_i32_0 = arith.constant 0 : i32
    return %arg0, %c0_i32 : i32, i32
  }
}

module attributes {stable_mosaic.version = 11 : i64} {
  func.func @_mlp_fused_kernel(%arg0: i32, %arg1: memref<16x16xbf16, #tpu.memory_space<vmem>>, %arg2: memref<16x128xbf16, #tpu.memory_space<vmem>>, %arg3: memref<1x128xf32, #tpu.memory_space<vmem>>, %arg4: memref<128x128xbf16, #tpu.memory_space<vmem>>, %arg5: memref<1x128xf32, #tpu.memory_space<vmem>>, %arg6: memref<128x128xbf16, #tpu.memory_space<vmem>>, %arg7: memref<1x128xf32, #tpu.memory_space<vmem>>, %arg8: memref<16x128xf32, #tpu.memory_space<vmem>>) attributes {dimension_semantics = [#tpu.dimension_semantics<parallel>], iteration_bounds = array<i64: 1>, scalar_prefetch = 0 : i64, scratch_operands = 0 : i64, tpu.core_type = #tpu.core_type<tc>, window_params = [{transform_indices = @transform_0, window_bounds = array<i64: 16, 16>}, {pipeline_mode = #tpu.pipeline_mode<synchronous>, transform_indices = @transform_1, window_bounds = array<i64: 16, 128>}, {pipeline_mode = #tpu.pipeline_mode<synchronous>, transform_indices = @transform_2, window_bounds = array<i64: 1, 128>}, {pipeline_mode = #tpu.pipeline_mode<synchronous>, transform_indices = @transform_3, window_bounds = array<i64: 128, 128>}, {pipeline_mode = #tpu.pipeline_mode<synchronous>, transform_indices = @transform_4, window_bounds = array<i64: 1, 128>}, {pipeline_mode = #tpu.pipeline_mode<synchronous>, transform_indices = @transform_5, window_bounds = array<i64: 128, 128>}, {pipeline_mode = #tpu.pipeline_mode<synchronous>, transform_indices = @transform_6, window_bounds = array<i64: 1, 128>}, {transform_indices = @transform_7, window_bounds = array<i64: 16, 128>}]} {
    %c0 = arith.constant 0 : index
    %c0_0 = arith.constant 0 : index
    %0 = vector.load %arg1[%c0, %c0_0] : memref<16x16xbf16, #tpu.memory_space<vmem>>, vector<16x16xbf16>
    %c0_1 = arith.constant 0 : index
    %c0_2 = arith.constant 0 : index
    %1 = vector.load %arg2[%c0_1, %c0_2] : memref<16x128xbf16, #tpu.memory_space<vmem>>, vector<16x128xbf16>
    %c0_3 = arith.constant 0 : index
    %c0_4 = arith.constant 0 : index
    %2 = vector.load %arg3[%c0_3, %c0_4] : memref<1x128xf32, #tpu.memory_space<vmem>>, vector<1x128xf32>
    %cst = arith.constant dense<0.000000e+00> : vector<16x128xf32>
    %3 = tpu.matmul %0, %1, %cst {dimension_numbers = #tpu.dot_dimension_numbers<[1], [0], [0], [1], [0, 0, 1, 1], [], []>} : vector<16x16xbf16>, vector<16x128xbf16>, vector<16x128xf32> -> vector<16x128xf32>
    %4 = vector.broadcast %2 : vector<1x128xf32> to vector<16x128xf32>
    %5 = arith.addf %3, %4 : vector<16x128xf32>
    %6 = arith.truncf %5 : vector<16x128xf32> to vector<16x128xbf16>
    %cst_5 = arith.constant 0.000000e+00 : bf16
    %7 = vector.broadcast %cst_5 : bf16 to vector<16x128xbf16>
    %8 = arith.maximumf %6, %7 : vector<16x128xbf16>
    %c0_6 = arith.constant 0 : index
    %c0_7 = arith.constant 0 : index
    %9 = vector.load %arg4[%c0_6, %c0_7] : memref<128x128xbf16, #tpu.memory_space<vmem>>, vector<128x128xbf16>
    %c0_8 = arith.constant 0 : index
    %c0_9 = arith.constant 0 : index
    %10 = vector.load %arg5[%c0_8, %c0_9] : memref<1x128xf32, #tpu.memory_space<vmem>>, vector<1x128xf32>
    %cst_10 = arith.constant dense<0.000000e+00> : vector<16x128xf32>
    %11 = tpu.matmul %8, %9, %cst_10 {dimension_numbers = #tpu.dot_dimension_numbers<[1], [0], [0], [1], [0, 0, 1, 1], [], []>} : vector<16x128xbf16>, vector<128x128xbf16>, vector<16x128xf32> -> vector<16x128xf32>
    %12 = vector.broadcast %10 : vector<1x128xf32> to vector<16x128xf32>
    %13 = arith.addf %11, %12 : vector<16x128xf32>
    %14 = arith.truncf %13 : vector<16x128xf32> to vector<16x128xbf16>
    %cst_11 = arith.constant 0.000000e+00 : bf16
    %15 = vector.broadcast %cst_11 : bf16 to vector<16x128xbf16>
    %16 = arith.maximumf %14, %15 : vector<16x128xbf16>
    %c0_12 = arith.constant 0 : index
    %c0_13 = arith.constant 0 : index
    %17 = vector.load %arg6[%c0_12, %c0_13] : memref<128x128xbf16, #tpu.memory_space<vmem>>, vector<128x128xbf16>
    %c0_14 = arith.constant 0 : index
    %c0_15 = arith.constant 0 : index
    %18 = vector.load %arg7[%c0_14, %c0_15] : memref<1x128xf32, #tpu.memory_space<vmem>>, vector<1x128xf32>
    %cst_16 = arith.constant dense<0.000000e+00> : vector<16x128xf32>
    %19 = tpu.matmul %16, %17, %cst_16 {dimension_numbers = #tpu.dot_dimension_numbers<[1], [0], [0], [1], [0, 0, 1, 1], [], []>} : vector<16x128xbf16>, vector<128x128xbf16>, vector<16x128xf32> -> vector<16x128xf32>
    %20 = vector.broadcast %18 : vector<1x128xf32> to vector<16x128xf32>
    %21 = arith.addf %19, %20 : vector<16x128xf32>
    %c0_17 = arith.constant 0 : index
    %c0_18 = arith.constant 0 : index
    %22 = vector.load %arg8[%c0_17, %c0_18] : memref<16x128xf32, #tpu.memory_space<vmem>>, vector<16x128xf32>
    tpu.vector_store %arg8[%c0_17, %c0_18], %21 {strides = array<i32>} : memref<16x128xf32, #tpu.memory_space<vmem>>, vector<16x128xf32>,
    return
  }
  func.func @transform_0(%arg0: i32) -> (i32, i32) {
    %c0_i32 = arith.constant 0 : i32
    %c0_i32_0 = arith.constant 0 : i32
    return %arg0, %c0_i32 : i32, i32
  }
  func.func @transform_1(%arg0: i32) -> (i32, i32) {
    %c0_i32 = arith.constant 0 : i32
    %c0_i32_0 = arith.constant 0 : i32
    %c0_i32_1 = arith.constant 0 : i32
    return %c0_i32, %c0_i32_0 : i32, i32
  }
  func.func @transform_2(%arg0: i32) -> (i32, i32) {
    %c0_i32 = arith.constant 0 : i32
    %c0_i32_0 = arith.constant 0 : i32
    %c0_i32_1 = arith.constant 0 : i32
    return %c0_i32, %c0_i32_0 : i32, i32
  }
  func.func @transform_3(%arg0: i32) -> (i32, i32) {
    %c0_i32 = arith.constant 0 : i32
    %c0_i32_0 = arith.constant 0 : i32
    %c0_i32_1 = arith.constant 0 : i32
    return %c0_i32, %c0_i32_0 : i32, i32
  }
  func.func @transform_4(%arg0: i32) -> (i32, i32) {
    %c0_i32 = arith.constant 0 : i32
    %c0_i32_0 = arith.constant 0 : i32
    %c0_i32_1 = arith.constant 0 : i32
    return %c0_i32, %c0_i32_0 : i32, i32
  }
  func.func @transform_5(%arg0: i32) -> (i32, i32) {
    %c0_i32 = arith.constant 0 : i32
    %c0_i32_0 = arith.constant 0 : i32
    %c0_i32_1 = arith.constant 0 : i32
    return %c0_i32, %c0_i32_0 : i32, i32
  }
  func.func @transform_6(%arg0: i32) -> (i32, i32) {
    %c0_i32 = arith.constant 0 : i32
    %c0_i32_0 = arith.constant 0 : i32
    %c0_i32_1 = arith.constant 0 : i32
    return %c0_i32, %c0_i32_0 : i32, i32
  }
  func.func @transform_7(%arg0: i32) -> (i32, i32) {
    %c0_i32 = arith.constant 0 : i32
    %c0_i32_0 = arith.constant 0 : i32
    return %arg0, %c0_i32 : i32, i32
  }
}

</mosaic_0001>

<bundles_post_ra>
// kernel: tpu_custom_call.1
= control target key start
LH: loop header
LB: loop body
LE: loop exit
PB: predicated region body
PF: predicated region fallthrough
CT: control target
= control target key end

     0   :  { %12 = vsyncpa [#allocation3], 0  ;;  %s633_s0 = inlined_call_operand.hbm [shape: bf16[16,16], index: 0, kind: input, shape index: {}]   ;;  %s634_s1 = inlined_call_operand.hbm [shape: bf16[16,128], index: 1, kind: input, shape index: {}]   ;;  %s635_s2 = inlined_call_operand.vmem [shape: f32[1,128], index: 2, kind: input, shape index: {}]   ;;  %s636_s3 = inlined_call_operand.hbm [shape: bf16[128,128], index: 3, kind: input, shape index: {}]   ;;  %s637_s4 = inlined_call_operand.vmem [shape: f32[1,128], index: 4, kind: input, shape index: {}]   ;;  %s638_s5 = inlined_call_operand.hbm [shape: bf16[128,128], index: 5, kind: input, shape index: {}]   ;;  %s639_s6 = inlined_call_operand.vmem [shape: f32[1,128], index: 6, kind: input, shape index: {}]   ;;  %s640_s7 = inlined_call_operand.hbm [shape: f32[16,128], index: 7, kind: output, shape index: {}]  }
   0x1   :  { %13 = vsyncpa [#allocation6], 0 }
   0x2   :  { %14 = vsyncpa [#allocation9], 0 }
   0x3   :  { %15 = vsyncpa [#allocation4], 0  ;;  %s33_s26 = sshll.u32 %s634_s1, 4  ;;  %s560_s27 = smov [#allocation5]   ;;  %s34_s26 = int_to_ptr.hbm [resolvable:$true] %s33_s26 }
   0x4   :  { %s35_s28 = sshll.u32 %s560_s27, 4  ;;  %s20_s8 = sshll.u32 %s633_s0, 4  ;;  %s36_s28 = int_to_ptr.vmem [resolvable:$true] %s35_s28  ;;  %s21_s8 = int_to_ptr.hbm [resolvable:$true] %s20_s8 }
   0x5   :  { %s561_s9 = smov 64   ;;  %s562_s10 = smov 4  }
   0x6   :  { %41 = dma.hbm_to_vmem [thread:$0]  %s34_s26, 128, %s36_s28, [#allocation6], %s561_s9, %s561_s9, %s562_s10  }
   0x7   :  { %s563_s11 = smov [#allocation2]   ;;  %s48_s15 = sshll.u32 %s636_s3, 4  ;;  %s49_s15 = int_to_ptr.hbm [resolvable:$true] %s48_s15 }
   0x8   :  { %s22_s12 = sshll.u32 %s563_s11, 4  ;;  %s63_s17 = sshll.u32 %s638_s5, 4  ;;  %s23_s12 = int_to_ptr.vmem [resolvable:$true] %s22_s12  ;;  %s64_s17 = int_to_ptr.hbm [resolvable:$true] %s63_s17 }
   0x9   :  { %28 = dma.hbm_to_vmem [thread:$0]  %s21_s8, 128, %s23_s12, [#allocation3], %s561_s9, %s561_s9, %s562_s10  }
   0xa   :  { %s564_s18 = smov [#allocation7]   ;;  %s565_s0 = smov [#allocation8]  }
   0xb   :  { %s50_s19 = sshll.u32 %s564_s18, 4  ;;  %s65_s20 = sshll.u32 %s565_s0, 4  ;;  %s51_s19 = int_to_ptr.vmem [resolvable:$true] %s50_s19  ;;  %s66_s20 = int_to_ptr.vmem [resolvable:$true] %s65_s20 }
   0xc   :  { %56 = dma.hbm_to_vmem [thread:$0]  %s49_s15, 1024, %s51_s19, [#allocation6], %s561_s9, %s561_s9, %s562_s10  }
   0xd   :  { %71 = dma.hbm_to_vmem [thread:$0]  %s64_s17, 1024, %s66_s20, [#allocation9], %s561_s9, %s561_s9, %s562_s10  }
   0xe   :  { %552 = dma.done.wait [#allocation3], 128  }
   0xf   :  { %553 = vsyncadd [#allocation3], 4294967168 }
  0x10   :  { %554 = dma.done.wait [#allocation6], 1152  }
  0x11   :  { %555 = vsyncadd [#allocation6], 4294966144 }
  0x12   :  { %556 = dma.done.wait [#allocation9], 1024  }
  0x13   :  { %557 = vsyncadd [#allocation9], 4294966272  ;;  %v403_v0 = vld [vmem:[#allocation5] sm:$0xff]  ;;  %v402_v2 = vld [vmem:[#allocation2] sm:$0xff]  ;;  %vm110_vm0 = vcmask 130048   ;;  %s566_s24 = smov [#allocation10]  }
  0x14   :  { %v411_v1 = vld [vmem:[#allocation7 + $0x38] sm:$0xff]  ;;  %121 = vmatpush.bf16.msra.mxu0 %v403_v0  ;;  %v410_v3 = vld [vmem:[#allocation7 + $0x30] sm:$0xff]  ;;  %v409_v4 = vld [vmem:[#allocation7 + $0x28] sm:$0xff]  ;;  %s312_s25 = sshll.u32 %s566_s24, 4  ;;  %s567_s28 = smov 128   ;;  %s313_s25 = int_to_ptr.vmem [resolvable:$true] %s312_s25 }
  0x15   :  { %203 = vmatpush.bf16.msra.mxu1 %v411_v1  ;;  %v408_v5 = vld [vmem:[#allocation7 + $0x20] sm:$0xff]  ;;  %v407_v6 = vld [vmem:[#allocation7 + $0x18] sm:$0xff]  ;;  %v406_v7 = vld [vmem:[#allocation7 + $0x10] sm:$0xff]  ;;  %s568_s29 = smov 8  }
  0x16   :  { %v405_v8 = vld [vmem:[#allocation7 + $0x8] sm:$0xff]  ;;  %v404_v9 = vld [vmem:[#allocation7] sm:$0xff]  ;;  %v419_v10 = vld [vmem:[#allocation8 + $0x38] sm:$0xff] }
  0x17   :  { %337 = vmatmul.msk.bf16.vlgmr.msra.gmra.mxu0 %vm110_vm0, %v402_v2  ;;  %292 = vmatpush.bf16.msra.mxu2 %v419_v10  ;;  %v418_v11 = vld [vmem:[#allocation8 + $0x30] sm:$0xff]  ;;  %v417_v12 = vld [vmem:[#allocation8 + $0x28] sm:$0xff]  ;;  %v416_v13 = vld [vmem:[#allocation8 + $0x20] sm:$0xff] }
  0x18   :  { %v429_v15 = vld [vmem:[%s635_s2] ss:$0 sm:$0xff]  ;;  %v415_v22 = vld [vmem:[#allocation8 + $0x18] sm:$0xff]  ;;  %v413_v24 = vld [vmem:[#allocation8 + $0x8] sm:$0xff] }
  0x19   :  { %204 = vmatpush.bf16.msra.mxu1 %v410_v3  ;;  %v414_v23 = vld [vmem:[#allocation8 + $0x10] sm:$0xff]  ;;  %v412_v25 = vld [vmem:[#allocation8] sm:$0xff] }
  0x1a   :  { %v430_v27 = vld [vmem:[%s637_s4] ss:$0 sm:$0xff]  ;;  %s314_s4 = sshll.u32 %s640_s7, 4  ;;  %s315_s4 = int_to_ptr.hbm [resolvable:$true] %s314_s4 }
  0x1b   :  { %293 = vmatpush.bf16.msra.mxu2 %v418_v11  ;;  %v431_v34 = vld [vmem:[%s639_s6] ss:$0 sm:$0xff] }
  0x1d   :  { %205 = vmatpush.bf16.msra.mxu1 %v409_v4 }
  0x1f   :  { %294 = vmatpush.bf16.msra.mxu2 %v417_v12 }
  0x21   :  { %206 = vmatpush.bf16.msra.mxu1 %v408_v5 }
  0x23   :  { %295 = vmatpush.bf16.msra.mxu2 %v416_v13 }
  0x25   :  { %207 = vmatpush.bf16.msra.mxu1 %v407_v6 }
  0x27   :  { %296 = vmatpush.bf16.msra.mxu2 %v415_v22 }
  0x29   :  { %208 = vmatpush.bf16.msra.mxu1 %v406_v7 }
  0x2b   :  { %297 = vmatpush.bf16.msra.mxu2 %v414_v23 }
  0x2d   :  { %209 = vmatpush.bf16.msra.mxu1 %v405_v8 }
  0x2f   :  { %298 = vmatpush.bf16.msra.mxu2 %v413_v24 }
  0x31   :  { %210 = vmatpush.bf16.msra.mxu1 %v404_v9 }
  0x33   :  { %299 = vmatpush.bf16.msra.mxu2 %v412_v25 }
  0x94   :  { %v123_v14 = vpop.f32.mrf.mxu0 }
  0x95   :  { %v124_v16 = vadd.f32 %v429_v15, %v123_v14 }
  0x97   :  { %v132_v19 = vmax.f32 %v124_v16, 0.0 }
  0x9c   :  { %v125_v17 = vpop.f32.mrf.mxu0 }
  0x9d   :  { %v126_v18 = vadd.f32 %v429_v15, %v125_v17 }
  0x9f   :  { %v133_v20 = vmax.f32 %v126_v18, 0.0 }
  0xa1   :  { %v134_v21 = vpack.c.bf16 %v133_v20, %v132_v19 }
  0xa3   :  { %211 = vmatmul.bf16.vlgmr.msra.gmra.mxu1 %v134_v21 }
 0x120   :  { %v212_v26 = vpop.f32.mrf.mxu1 }
 0x121   :  { %v213_v28 = vadd.f32 %v430_v27, %v212_v26 }
 0x123   :  { %v221_v31 = vmax.f32 %v213_v28, 0.0 }
 0x128   :  { %v214_v29 = vpop.f32.mrf.mxu1 }
 0x129   :  { %v215_v30 = vadd.f32 %v430_v27, %v214_v29 }
 0x12b   :  { %v222_v32 = vmax.f32 %v215_v30, 0.0 }
 0x12d   :  { %v223_v33 = vpack.c.bf16 %v222_v32, %v221_v31 }
 0x12f   :  { %300 = vmatmul.bf16.vlgmr.msra.gmra.mxu2 %v223_v33 }
 0x1b2   :  { %v301_v35 = vpop.f32.mrf.mxu2 }
 0x1b3   :  { %v302_v36 = vadd.f32 %v431_v34, %v301_v35 }
 0x1b5   :  { %306 = vst [vmem:[#allocation10] sm:$0xff] %v302_v36 }
 0x1ba   :  { %v303_v37 = vpop.f32.mrf.mxu2 }
 0x1bb   :  { %v304_v38 = vadd.f32 %v431_v34, %v303_v37 }
 0x1bd   :  { %307 = vst [vmem:[#allocation10 + $0x8] sm:$0xff] %v304_v38 }
 0x1be   :  { %320 = dma.vmem_to_hbm [thread:$0]  %s313_s25, 256, %s315_s4, [#allocation4], %s567_s28, %s567_s28, %s568_s29  }
 0x1bf   :  { %558 = dma.done.wait [#allocation4], 256  }
 0x1c0   :  { %559 = vsyncadd [#allocation4], 4294967040 }
 0x1c1   :  { %325 = vsyncpa [#allocation3], 1 }
 0x1c2   :  { %326 = vsyncpa [#allocation6], 1 }
 0x1c3   :  { %327 = vsyncpa [#allocation9], 1 }
 0x1c4   :  { %328 = vsyncpa [#allocation4], 1 }

// kernel: tpu_custom_call.1
= control target key start
LH: loop header
LB: loop body
LE: loop exit
PB: predicated region body
PF: predicated region fallthrough
CT: control target
= control target key end

     0   :  { %12 = vsyncpa [#allocation3], 0  ;;  %s633_s0 = inlined_call_operand.hbm [shape: bf16[16,16], index: 0, kind: input, shape index: {}]   ;;  %s634_s1 = inlined_call_operand.hbm [shape: bf16[16,128], index: 1, kind: input, shape index: {}]   ;;  %s635_s2 = inlined_call_operand.vmem [shape: f32[1,128], index: 2, kind: input, shape index: {}]   ;;  %s636_s3 = inlined_call_operand.hbm [shape: bf16[128,128], index: 3, kind: input, shape index: {}]   ;;  %s637_s4 = inlined_call_operand.vmem [shape: f32[1,128], index: 4, kind: input, shape index: {}]   ;;  %s638_s5 = inlined_call_operand.hbm [shape: bf16[128,128], index: 5, kind: input, shape index: {}]   ;;  %s639_s6 = inlined_call_operand.vmem [shape: f32[1,128], index: 6, kind: input, shape index: {}]   ;;  %s640_s7 = inlined_call_operand.hbm [shape: f32[16,128], index: 7, kind: output, shape index: {}]  }
   0x1   :  { %13 = vsyncpa [#allocation6], 0 }
   0x2   :  { %14 = vsyncpa [#allocation9], 0 }
   0x3   :  { %15 = vsyncpa [#allocation4], 0  ;;  %s33_s26 = sshll.u32 %s634_s1, 4  ;;  %s560_s27 = smov [#allocation5]   ;;  %s34_s26 = int_to_ptr.hbm [resolvable:$true] %s33_s26 }
   0x4   :  { %s35_s28 = sshll.u32 %s560_s27, 4  ;;  %s20_s8 = sshll.u32 %s633_s0, 4  ;;  %s36_s28 = int_to_ptr.vmem [resolvable:$true] %s35_s28  ;;  %s21_s8 = int_to_ptr.hbm [resolvable:$true] %s20_s8 }
   0x5   :  { %s561_s9 = smov 64   ;;  %s562_s10 = smov 4  }
   0x6   :  { %41 = dma.hbm_to_vmem [thread:$0]  %s34_s26, 128, %s36_s28, [#allocation6], %s561_s9, %s561_s9, %s562_s10  }
   0x7   :  { %s563_s11 = smov [#allocation2]   ;;  %s48_s15 = sshll.u32 %s636_s3, 4  ;;  %s49_s15 = int_to_ptr.hbm [resolvable:$true] %s48_s15 }
   0x8   :  { %s22_s12 = sshll.u32 %s563_s11, 4  ;;  %s63_s17 = sshll.u32 %s638_s5, 4  ;;  %s23_s12 = int_to_ptr.vmem [resolvable:$true] %s22_s12  ;;  %s64_s17 = int_to_ptr.hbm [resolvable:$true] %s63_s17 }
   0x9   :  { %28 = dma.hbm_to_vmem [thread:$0]  %s21_s8, 128, %s23_s12, [#allocation3], %s561_s9, %s561_s9, %s562_s10  }
   0xa   :  { %s564_s18 = smov [#allocation7]   ;;  %s565_s0 = smov [#allocation8]  }
   0xb   :  { %s50_s19 = sshll.u32 %s564_s18, 4  ;;  %s65_s20 = sshll.u32 %s565_s0, 4  ;;  %s51_s19 = int_to_ptr.vmem [resolvable:$true] %s50_s19  ;;  %s66_s20 = int_to_ptr.vmem [resolvable:$true] %s65_s20 }
   0xc   :  { %56 = dma.hbm_to_vmem [thread:$0]  %s49_s15, 1024, %s51_s19, [#allocation6], %s561_s9, %s561_s9, %s562_s10  }
   0xd   :  { %71 = dma.hbm_to_vmem [thread:$0]  %s64_s17, 1024, %s66_s20, [#allocation9], %s561_s9, %s561_s9, %s562_s10  }
   0xe   :  { %552 = dma.done.wait [#allocation3], 128  }
   0xf   :  { %553 = vsyncadd [#allocation3], 4294967168 }
  0x10   :  { %554 = dma.done.wait [#allocation6], 1152  }
  0x11   :  { %555 = vsyncadd [#allocation6], 4294966144 }
  0x12   :  { %556 = dma.done.wait [#allocation9], 1024  }
  0x13   :  { %557 = vsyncadd [#allocation9], 4294966272  ;;  %v403_v0 = vld [vmem:[#allocation5] sm:$0xff]  ;;  %v402_v2 = vld [vmem:[#allocation2] sm:$0xff]  ;;  %vm110_vm0 = vcmask 130048   ;;  %s566_s24 = smov [#allocation10]  }
  0x14   :  { %v411_v1 = vld [vmem:[#allocation7 + $0x38] sm:$0xff]  ;;  %121 = vmatpush.bf16.msra.mxu0 %v403_v0  ;;  %v410_v3 = vld [vmem:[#allocation7 + $0x30] sm:$0xff]  ;;  %v409_v4 = vld [vmem:[#allocation7 + $0x28] sm:$0xff]  ;;  %s312_s25 = sshll.u32 %s566_s24, 4  ;;  %s567_s28 = smov 128   ;;  %s313_s25 = int_to_ptr.vmem [resolvable:$true] %s312_s25 }
  0x15   :  { %203 = vmatpush.bf16.msra.mxu1 %v411_v1  ;;  %v408_v5 = vld [vmem:[#allocation7 + $0x20] sm:$0xff]  ;;  %v407_v6 = vld [vmem:[#allocation7 + $0x18] sm:$0xff]  ;;  %v406_v7 = vld [vmem:[#allocation7 + $0x10] sm:$0xff]  ;;  %s568_s29 = smov 8  }
  0x16   :  { %v405_v8 = vld [vmem:[#allocation7 + $0x8] sm:$0xff]  ;;  %v404_v9 = vld [vmem:[#allocation7] sm:$0xff]  ;;  %v419_v10 = vld [vmem:[#allocation8 + $0x38] sm:$0xff] }
  0x17   :  { %337 = vmatmul.msk.bf16.vlgmr.msra.gmra.mxu0 %vm110_vm0, %v402_v2  ;;  %292 = vmatpush.bf16.msra.mxu2 %v419_v10  ;;  %v418_v11 = vld [vmem:[#allocation8 + $0x30] sm:$0xff]  ;;  %v417_v12 = vld [vmem:[#allocation8 + $0x28] sm:$0xff]  ;;  %v416_v13 = vld [vmem:[#allocation8 + $0x20] sm:$0xff] }
  0x18   :  { %v429_v15 = vld [vmem:[%s635_s2] ss:$0 sm:$0xff]  ;;  %v415_v22 = vld [vmem:[#allocation8 + $0x18] sm:$0xff]  ;;  %v413_v24 = vld [vmem:[#allocation8 + $0x8] sm:$0xff] }
  0x19   :  { %204 = vmatpush.bf16.msra.mxu1 %v410_v3  ;;  %v414_v23 = vld [vmem:[#allocation8 + $0x10] sm:$0xff]  ;;  %v412_v25 = vld [vmem:[#allocation8] sm:$0xff] }
  0x1a   :  { %v430_v27 = vld [vmem:[%s637_s4] ss:$0 sm:$0xff]  ;;  %s314_s4 = sshll.u32 %s640_s7, 4  ;;  %s315_s4 = int_to_ptr.hbm [resolvable:$true] %s314_s4 }
  0x1b   :  { %293 = vmatpush.bf16.msra.mxu2 %v418_v11  ;;  %v431_v34 = vld [vmem:[%s639_s6] ss:$0 sm:$0xff] }
  0x1d   :  { %205 = vmatpush.bf16.msra.mxu1 %v409_v4 }
  0x1f   :  { %294 = vmatpush.bf16.msra.mxu2 %v417_v12 }
  0x21   :  { %206 = vmatpush.bf16.msra.mxu1 %v408_v5 }
  0x23   :  { %295 = vmatpush.bf16.msra.mxu2 %v416_v13 }
  0x25   :  { %207 = vmatpush.bf16.msra.mxu1 %v407_v6 }
  0x27   :  { %296 = vmatpush.bf16.msra.mxu2 %v415_v22 }
  0x29   :  { %208 = vmatpush.bf16.msra.mxu1 %v406_v7 }
  0x2b   :  { %297 = vmatpush.bf16.msra.mxu2 %v414_v23 }
  0x2d   :  { %209 = vmatpush.bf16.msra.mxu1 %v405_v8 }
  0x2f   :  { %298 = vmatpush.bf16.msra.mxu2 %v413_v24 }
  0x31   :  { %210 = vmatpush.bf16.msra.mxu1 %v404_v9 }
  0x33   :  { %299 = vmatpush.bf16.msra.mxu2 %v412_v25 }
  0x94   :  { %v123_v14 = vpop.f32.mrf.mxu0 }
  0x95   :  { %v124_v16 = vadd.f32 %v429_v15, %v123_v14 }
  0x97   :  { %v132_v19 = vmax.f32 %v124_v16, 0.0 }
  0x9c   :  { %v125_v17 = vpop.f32.mrf.mxu0 }
  0x9d   :  { %v126_v18 = vadd.f32 %v429_v15, %v125_v17 }
  0x9f   :  { %v133_v20 = vmax.f32 %v126_v18, 0.0 }
  0xa1   :  { %v134_v21 = vpack.c.bf16 %v133_v20, %v132_v19 }
  0xa3   :  { %211 = vmatmul.bf16.vlgmr.msra.gmra.mxu1 %v134_v21 }
 0x120   :  { %v212_v26 = vpop.f32.mrf.mxu1 }
 0x121   :  { %v213_v28 = vadd.f32 %v430_v27, %v212_v26 }
 0x123   :  { %v221_v31 = vmax.f32 %v213_v28, 0.0 }
 0x128   :  { %v214_v29 = vpop.f32.mrf.mxu1 }
 0x129   :  { %v215_v30 = vadd.f32 %v430_v27, %v214_v29 }
 0x12b   :  { %v222_v32 = vmax.f32 %v215_v30, 0.0 }
 0x12d   :  { %v223_v33 = vpack.c.bf16 %v222_v32, %v221_v31 }
 0x12f   :  { %300 = vmatmul.bf16.vlgmr.msra.gmra.mxu2 %v223_v33 }
 0x1b2   :  { %v301_v35 = vpop.f32.mrf.mxu2 }
 0x1b3   :  { %v302_v36 = vadd.f32 %v431_v34, %v301_v35 }
 0x1b5   :  { %306 = vst [vmem:[#allocation10] sm:$0xff] %v302_v36 }
 0x1ba   :  { %v303_v37 = vpop.f32.mrf.mxu2 }
 0x1bb   :  { %v304_v38 = vadd.f32 %v431_v34, %v303_v37 }
 0x1bd   :  { %307 = vst [vmem:[#allocation10 + $0x8] sm:$0xff] %v304_v38 }
 0x1be   :  { %320 = dma.vmem_to_hbm [thread:$0]  %s313_s25, 256, %s315_s4, [#allocation4], %s567_s28, %s567_s28, %s568_s29  }
 0x1bf   :  { %558 = dma.done.wait [#allocation4], 256  }
 0x1c0   :  { %559 = vsyncadd [#allocation4], 4294967040 }
 0x1c1   :  { %325 = vsyncpa [#allocation3], 1 }
 0x1c2   :  { %326 = vsyncpa [#allocation6], 1 }
 0x1c3   :  { %327 = vsyncpa [#allocation9], 1 }
 0x1c4   :  { %328 = vsyncpa [#allocation4], 1 }

</bundles_post_ra>
